<compile_context>
chip_gen: v5e
topology: v5e:2x2
jax: 0.10.0
libtpu: 0.0.40
codegen_flags: <defaults>
</compile_context>

<pallas_src>
import functools

import jax
import jax.numpy as jnp
from jax.experimental import pallas as pl
from jax.experimental.pallas import tpu as pltpu


# v5e has 128-wide MXUs -> keep TB=128 there; v6e/v7x are 256-wide.
try:
    _IS_V5 = "v5" in jax.devices()[0].device_kind.lower()
except Exception:  # pragma: no cover - defensive, backend should be TPU
    _IS_V5 = False


def _pick_tb(batch):
    if batch >= 256 and not _IS_V5:
        return 256
    if batch >= 128:
        return 128
    return max(8, ((batch + 7) // 8) * 8)


def gaussian_policy_kernel(x_ref, w1_ref, b1_ref, w2_ref, b2_ref,
                           wh_ref, bh_ref, out_ref, *, n_actions):
    # hidden1 + relu (bf16 MXU inputs, f32 accumulate / epilogue)
    h1 = jnp.dot(x_ref[...].astype(jnp.bfloat16), w1_ref[...],
                 preferred_element_type=jnp.float32)
    h1 = jnp.maximum(h1 + b1_ref[...], 0.0)
    # hidden2 + relu
    h2 = jnp.dot(h1.astype(jnp.bfloat16), w2_ref[...],
                 preferred_element_type=jnp.float32)
    h2 = jnp.maximum(h2 + b2_ref[...], 0.0)
    # fused heads: columns [0, A) = mu, [A, 2A) = log_std, rest = zero padding
    heads = jnp.dot(h2.astype(jnp.bfloat16), wh_ref[...],
                    preferred_element_type=jnp.float32) + bh_ref[...]
    # std = exp(clamp(log_std, -20, 2)); select per-column so no lane slicing.
    std = jnp.exp(jnp.clip(heads, -20.0, 2.0))
    col = jax.lax.broadcasted_iota(jnp.int32, heads.shape, dimension=1)
    out_ref[...] = jnp.where(col < n_actions, heads, std).astype(out_ref.dtype)


def gaussian_policy_forward(states, params, *, n_actions):
    """states: [B, n_states] f32. params: prepare_params() output.
    Returns (mu, std), each [B, n_actions] f32 (the Normal dist parameters)."""
    B, S = states.shape
    H = params["w1"].shape[1]
    HP = params["wh"].shape[1]          # lane-padded fused head width (>= 128)

    TB = _pick_tb(B)
    n_tiles = pl.cdiv(B, TB)            # boundary block masked by Pallas

    kernel = functools.partial(gaussian_policy_kernel, n_actions=n_actions)

    out = pl.pallas_call(
        kernel,
        out_shape=jax.ShapeDtypeStruct((B, HP), jnp.float32),
        grid=(n_tiles,),
        in_specs=[
            pl.BlockSpec((TB, S), lambda i: (i, 0)),     # states: tiled on batch
            pl.BlockSpec((S, H), lambda i: (0, 0)),      # w1 (bf16), VMEM-resident
            pl.BlockSpec((1, H), lambda i: (0, 0)),      # b1 (f32)
            pl.BlockSpec((H, H), lambda i: (0, 0)),      # w2 (bf16)
            pl.BlockSpec((1, H), lambda i: (0, 0)),      # b2 (f32)
            pl.BlockSpec((H, HP), lambda i: (0, 0)),     # fused+padded head weight (bf16)
            pl.BlockSpec((1, HP), lambda i: (0, 0)),     # fused+padded head bias (f32)
        ],
        out_specs=pl.BlockSpec((TB, HP), lambda i: (i, 0)),
        compiler_params=pltpu.CompilerParams(
            dimension_semantics=("parallel",)),
    )(states,
      params["w1"], params["b1"],
      params["w2"], params["b2"],
      params["wh"], params["bh"])

    return out[:, :n_actions], out[:, n_actions:2 * n_actions]   # (mu, std)


def prepare_params(raw):
    """Hoisted parameter prep: fuse mu/log_std heads, zero-pad the fused head
    to a 128-lane multiple, and cast matmul weights to bf16."""
    two_a = raw["wmu"].shape[1] + raw["wls"].shape[1]
    hp = max(128, ((two_a + 127) // 128) * 128)
    wh = jnp.concatenate([raw["wmu"], raw["wls"]], axis=1)
    bh = jnp.concatenate([raw["bmu"], raw["bls"]], axis=1)
    wh = jnp.pad(wh, ((0, 0), (0, hp - two_a)))
    bh = jnp.pad(bh, ((0, 0), (0, hp - two_a)))
    return {
        "w1": raw["w1"].astype(jnp.bfloat16),
        "b1": raw["b1"].astype(jnp.float32),
        "w2": raw["w2"].astype(jnp.bfloat16),
        "b2": raw["b2"].astype(jnp.float32),
        "wh": wh.astype(jnp.bfloat16),
        "bh": bh.astype(jnp.float32),
    }


def init_params(key, n_states, n_actions, n_hidden):
    """Deterministic synthetic init mirroring the PyTorch module:
    kaiming-normal (he, fan_in) for hidden layers, xavier-uniform for the
    mu / log_std heads, zero biases. Weights are [in, out]."""
    k1, k2, k3, k4 = jax.random.split(key, 4)

    def he_normal(k, fan_in, fan_out):
        std = jnp.sqrt(2.0 / fan_in)
        return jax.random.normal(k, (fan_in, fan_out), jnp.float32) * std

    def xavier_uniform(k, fan_in, fan_out):
        bound = jnp.sqrt(6.0 / (fan_in + fan_out))
        return jax.random.uniform(k, (fan_in, fan_out), jnp.float32,
                                  minval=-bound, maxval=bound)

    return {
        "w1": he_normal(k1, n_states, n_hidden),
        "b1": jnp.zeros((1, n_hidden), jnp.float32),
        "w2": he_normal(k2, n_hidden, n_hidden),
        "b2": jnp.zeros((1, n_hidden), jnp.float32),
        "wmu": xavier_uniform(k3, n_hidden, n_actions),
        "bmu": jnp.zeros((1, n_actions), jnp.float32),
        "wls": xavier_uniform(k4, n_hidden, n_actions),
        "bls": jnp.zeros((1, n_actions), jnp.float32),
    }


if __name__ == "__main__":
    key = jax.random.PRNGKey(0)
    k_params, k_states = jax.random.split(key)

    B, n_states, n_actions, n_hidden = 8, 16, 8, 256
    raw = init_params(k_params, n_states, n_actions, n_hidden)
    params = prepare_params(raw)
    states = jax.random.normal(k_states, (B, n_states), jnp.float32)

    fwd = jax.jit(functools.partial(gaussian_policy_forward,
                                    n_actions=n_actions))
    mu, std = fwd(states, params)
    jax.block_until_ready((mu, std))

    # Pure-JAX full-precision (f32) reference of the original module forward.
    # Kernel uses bf16 matmul inputs -> tolerance loosened accordingly.
    dot = lambda a, b: jnp.dot(a, b, precision=jax.lax.Precision.HIGHEST)
    h1 = jnp.maximum(dot(states, raw["w1"]) + raw["b1"], 0.0)
    h2 = jnp.maximum(dot(h1, raw["w2"]) + raw["b2"], 0.0)
    mu_ref = dot(h2, raw["wmu"]) + raw["bmu"]
    std_ref = jnp.exp(jnp.clip(dot(h2, raw["wls"]) + raw["bls"], -20.0, 2.0))

    assert mu.shape == (B, n_actions) and std.shape == (B, n_actions)
    assert jnp.allclose(mu, mu_ref, atol=5e-2, rtol=5e-2)
    assert jnp.allclose(std, std_ref, atol=5e-2, rtol=5e-2)

    # TODO(synk): torch.distributions.Normal object itself has no Pallas
    # equivalent; the kernel returns its defining parameters (mu, std).
    print("KERNEL_OK")
</pallas_src>

<mosaic_0001>
module attributes {stable_mosaic.version = 11 : i64} {
  func.func @gaussian_policy_kernel(%arg0: i32, %arg1: memref<8x16xf32, #tpu.memory_space<vmem>>, %arg2: memref<16x256xbf16, #tpu.memory_space<vmem>>, %arg3: memref<1x256xf32, #tpu.memory_space<vmem>>, %arg4: memref<256x256xbf16, #tpu.memory_space<vmem>>, %arg5: memref<1x256xf32, #tpu.memory_space<vmem>>, %arg6: memref<256x128xbf16, #tpu.memory_space<vmem>>, %arg7: memref<1x128xf32, #tpu.memory_space<vmem>>, %arg8: memref<8x128xf32, #tpu.memory_space<vmem>>) attributes {dimension_semantics = [#tpu.dimension_semantics<parallel>], iteration_bounds = array<i64: 1>, scalar_prefetch = 0 : i64, scratch_operands = 0 : i64, tpu.core_type = #tpu.core_type<tc>, window_params = [{transform_indices = @transform_0, window_bounds = array<i64: 8, 16>}, {pipeline_mode = #tpu.pipeline_mode<synchronous>, transform_indices = @transform_1, window_bounds = array<i64: 16, 256>}, {pipeline_mode = #tpu.pipeline_mode<synchronous>, transform_indices = @transform_2, window_bounds = array<i64: 1, 256>}, {pipeline_mode = #tpu.pipeline_mode<synchronous>, transform_indices = @transform_3, window_bounds = array<i64: 256, 256>}, {pipeline_mode = #tpu.pipeline_mode<synchronous>, transform_indices = @transform_4, window_bounds = array<i64: 1, 256>}, {pipeline_mode = #tpu.pipeline_mode<synchronous>, transform_indices = @transform_5, window_bounds = array<i64: 256, 128>}, {pipeline_mode = #tpu.pipeline_mode<synchronous>, transform_indices = @transform_6, window_bounds = array<i64: 1, 128>}, {transform_indices = @transform_7, window_bounds = array<i64: 8, 128>}]} {
    %c0 = arith.constant 0 : index
    %c0_0 = arith.constant 0 : index
    %0 = vector.load %arg1[%c0, %c0_0] : memref<8x16xf32, #tpu.memory_space<vmem>>, vector<8x16xf32>
    %1 = arith.truncf %0 : vector<8x16xf32> to vector<8x16xbf16>
    %c0_1 = arith.constant 0 : index
    %c0_2 = arith.constant 0 : index
    %2 = vector.load %arg2[%c0_1, %c0_2] : memref<16x256xbf16, #tpu.memory_space<vmem>>, vector<16x256xbf16>
    %cst = arith.constant dense<0.000000e+00> : vector<8x256xf32>
    %3 = tpu.matmul %1, %2, %cst {dimension_numbers = #tpu.dot_dimension_numbers<[1], [0], [0], [1], [0, 0, 1, 1], [], []>} : vector<8x16xbf16>, vector<16x256xbf16>, vector<8x256xf32> -> vector<8x256xf32>
    %c0_3 = arith.constant 0 : index
    %c0_4 = arith.constant 0 : index
    %4 = vector.load %arg3[%c0_3, %c0_4] : memref<1x256xf32, #tpu.memory_space<vmem>>, vector<1x256xf32>
    %5 = vector.broadcast %4 : vector<1x256xf32> to vector<8x256xf32>
    %6 = arith.addf %3, %5 : vector<8x256xf32>
    %cst_5 = arith.constant 0.000000e+00 : f32
    %7 = vector.broadcast %cst_5 : f32 to vector<8x256xf32>
    %8 = arith.maximumf %6, %7 : vector<8x256xf32>
    %9 = arith.truncf %8 : vector<8x256xf32> to vector<8x256xbf16>
    %c0_6 = arith.constant 0 : index
    %c0_7 = arith.constant 0 : index
    %10 = vector.load %arg4[%c0_6, %c0_7] : memref<256x256xbf16, #tpu.memory_space<vmem>>, vector<256x256xbf16>
    %cst_8 = arith.constant dense<0.000000e+00> : vector<8x256xf32>
    %11 = tpu.matmul %9, %10, %cst_8 {dimension_numbers = #tpu.dot_dimension_numbers<[1], [0], [0], [1], [0, 0, 1, 1], [], []>} : vector<8x256xbf16>, vector<256x256xbf16>, vector<8x256xf32> -> vector<8x256xf32>
    %c0_9 = arith.constant 0 : index
    %c0_10 = arith.constant 0 : index
    %12 = vector.load %arg5[%c0_9, %c0_10] : memref<1x256xf32, #tpu.memory_space<vmem>>, vector<1x256xf32>
    %13 = vector.broadcast %12 : vector<1x256xf32> to vector<8x256xf32>
    %14 = arith.addf %11, %13 : vector<8x256xf32>
    %cst_11 = arith.constant 0.000000e+00 : f32
    %15 = vector.broadcast %cst_11 : f32 to vector<8x256xf32>
    %16 = arith.maximumf %14, %15 : vector<8x256xf32>
    %17 = arith.truncf %16 : vector<8x256xf32> to vector<8x256xbf16>
    %c0_12 = arith.constant 0 : index
    %c0_13 = arith.constant 0 : index
    %18 = vector.load %arg6[%c0_12, %c0_13] : memref<256x128xbf16, #tpu.memory_space<vmem>>, vector<256x128xbf16>
    %cst_14 = arith.constant dense<0.000000e+00> : vector<8x128xf32>
    %19 = tpu.matmul %17, %18, %cst_14 {dimension_numbers = #tpu.dot_dimension_numbers<[1], [0], [0], [1], [0, 0, 1, 1], [], []>} : vector<8x256xbf16>, vector<256x128xbf16>, vector<8x128xf32> -> vector<8x128xf32>
    %c0_15 = arith.constant 0 : index
    %c0_16 = arith.constant 0 : index
    %20 = vector.load %arg7[%c0_15, %c0_16] : memref<1x128xf32, #tpu.memory_space<vmem>>, vector<1x128xf32>
    %21 = vector.broadcast %20 : vector<1x128xf32> to vector<8x128xf32>
    %22 = arith.addf %19, %21 : vector<8x128xf32>
    %cst_17 = arith.constant -2.000000e+01 : f32
    %cst_18 = arith.constant 2.000000e+00 : f32
    %23 = vector.broadcast %cst_17 : f32 to vector<8x128xf32>
    %24 = arith.maximumf %23, %22 : vector<8x128xf32>
    %25 = vector.broadcast %cst_18 : f32 to vector<8x128xf32>
    %26 = arith.minimumf %25, %24 : vector<8x128xf32>
    %27 = math.exp %26 : vector<8x128xf32>
    %28 = tpu.iota {dimensions = array<i32: 1>} : vector<8x128xi32>
    %c8_i32 = arith.constant 8 : i32
    %29 = vector.broadcast %c8_i32 : i32 to vector<8x128xi32>
    %30 = arith.cmpi slt, %28, %29 : vector<8x128xi32>
    %31 = arith.select %30, %22, %27 : vector<8x128xi1>, vector<8x128xf32>
    %c0_19 = arith.constant 0 : index
    %c0_20 = arith.constant 0 : index
    %32 = vector.load %arg8[%c0_19, %c0_20] : memref<8x128xf32, #tpu.memory_space<vmem>>, vector<8x128xf32>
    tpu.vector_store %arg8[%c0_19, %c0_20], %31 {strides = array<i32>} : memref<8x128xf32, #tpu.memory_space<vmem>>, vector<8x128xf32>,
    return
  }
  func.func @transform_0(%arg0: i32) -> (i32, i32) {
    %c0_i32 = arith.constant 0 : i32
    %c0_i32_0 = arith.constant 0 : i32
    return %arg0, %c0_i32 : i32, i32
  }
  func.func @transform_1(%arg0: i32) -> (i32, i32) {
    %c0_i32 = arith.constant 0 : i32
    %c0_i32_0 = arith.constant 0 : i32
    %c0_i32_1 = arith.constant 0 : i32
    return %c0_i32, %c0_i32_0 : i32, i32
  }
  func.func @transform_2(%arg0: i32) -> (i32, i32) {
    %c0_i32 = arith.constant 0 : i32
    %c0_i32_0 = arith.constant 0 : i32
    %c0_i32_1 = arith.constant 0 : i32
    return %c0_i32, %c0_i32_0 : i32, i32
  }
  func.func @transform_3(%arg0: i32) -> (i32, i32) {
    %c0_i32 = arith.constant 0 : i32
    %c0_i32_0 = arith.constant 0 : i32
    %c0_i32_1 = arith.constant 0 : i32
    return %c0_i32, %c0_i32_0 : i32, i32
  }
  func.func @transform_4(%arg0: i32) -> (i32, i32) {
    %c0_i32 = arith.constant 0 : i32
    %c0_i32_0 = arith.constant 0 : i32
    %c0_i32_1 = arith.constant 0 : i32
    return %c0_i32, %c0_i32_0 : i32, i32
  }
  func.func @transform_5(%arg0: i32) -> (i32, i32) {
    %c0_i32 = arith.constant 0 : i32
    %c0_i32_0 = arith.constant 0 : i32
    %c0_i32_1 = arith.constant 0 : i32
    return %c0_i32, %c0_i32_0 : i32, i32
  }
  func.func @transform_6(%arg0: i32) -> (i32, i32) {
    %c0_i32 = arith.constant 0 : i32
    %c0_i32_0 = arith.constant 0 : i32
    %c0_i32_1 = arith.constant 0 : i32
    return %c0_i32, %c0_i32_0 : i32, i32
  }
  func.func @transform_7(%arg0: i32) -> (i32, i32) {
    %c0_i32 = arith.constant 0 : i32
    %c0_i32_0 = arith.constant 0 : i32
    return %arg0, %c0_i32 : i32, i32
  }
}

</mosaic_0001>

<bundles_post_ra>
// kernel: gaussian_policy_forward.1
= control target key start
LH: loop header
LB: loop body
LE: loop exit
PB: predicated region body
PF: predicated region fallthrough
CT: control target
= control target key end

     0   :  { %12 = vsyncpa [#allocation3], 0  ;;  %s1091_s0 = inlined_call_operand.hbm [shape: f32[8,16], index: 0, kind: input, shape index: {}]   ;;  %s1092_s1 = inlined_call_operand.hbm [shape: bf16[16,256], index: 1, kind: input, shape index: {}]   ;;  %s1093_s2 = inlined_call_operand.hbm [shape: f32[1,256], index: 2, kind: input, shape index: {}]   ;;  %s1094_s3 = inlined_call_operand.hbm [shape: bf16[256,256], index: 3, kind: input, shape index: {}]   ;;  %s1095_s4 = inlined_call_operand.hbm [shape: f32[1,256], index: 4, kind: input, shape index: {}]   ;;  %s1096_s5 = inlined_call_operand.hbm [shape: bf16[256,128], index: 5, kind: input, shape index: {}]   ;;  %s1097_s6 = inlined_call_operand.vmem [shape: f32[1,128], index: 6, kind: input, shape index: {}]   ;;  %s1098_s7 = inlined_call_operand.vmem [shape: f32[8,128], index: 7, kind: output, shape index: {}]  }
   0x1   :  { %13 = vsyncpa [#allocation5], 0 }
   0x2   :  { %14 = vsyncpa [#allocation8], 0  ;;  %s31_s26 = sshll.u32 %s1092_s1, 4  ;;  %s32_s26 = int_to_ptr.hbm [resolvable:$true] %s31_s26 }
   0x3   :  { %15 = vsyncpa [#allocation11], 0  ;;  %s1015_s27 = smov [#allocation4]   ;;  %s55_s8 = sshll.u32 %s1094_s3, 4  ;;  %s56_s8 = int_to_ptr.hbm [resolvable:$true] %s55_s8 }
   0x4   :  { %s33_s28 = sshll.u32 %s1015_s27, 4  ;;  %s1016_s9 = smov 128   ;;  %s34_s28 = int_to_ptr.vmem [resolvable:$true] %s33_s28 }
   0x5   :  { %s1017_s10 = smov 8   ;;  %s1018_s11 = smov [#allocation7]  }
   0x6   :  { %39 = dma.hbm_to_vmem [thread:$0]  %s32_s26, 256, %s34_s28, [#allocation5], %s1016_s9, %s1016_s9, %s1017_s10  }
   0x7   :  { %s57_s12 = sshll.u32 %s1018_s11, 4  ;;  %s21_s15 = sshll.u32 %s1091_s0, 4  ;;  %s58_s12 = int_to_ptr.vmem [resolvable:$true] %s57_s12  ;;  %s22_s15 = int_to_ptr.hbm [resolvable:$true] %s21_s15 }
   0x8   :  { %63 = dma.hbm_to_vmem [thread:$0]  %s56_s8, 4096, %s58_s12, [#allocation8], %s1016_s9, %s1016_s9, %s1017_s10  }
   0x9   :  { %s45_s17 = sshll.u32 %s1093_s2, 4  ;;  %s1019_s18 = smov [#allocation2]   ;;  %s46_s17 = int_to_ptr.hbm [resolvable:$true] %s45_s17 }
   0xa   :  { %s23_s19 = sshll.u32 %s1019_s18, 4  ;;  %s1020_s3 = smov [#allocation6]   ;;  %s24_s19 = int_to_ptr.vmem [resolvable:$true] %s23_s19 }
   0xb   :  { %26 = dma.hbm_to_vmem [thread:$0]  %s22_s15, 128, %s24_s19, [#allocation3]  }
   0xc   :  { %s47_s20 = sshll.u32 %s1020_s3, 4  ;;  %s69_s23 = sshll.u32 %s1095_s4, 4  ;;  %s48_s20 = int_to_ptr.vmem [resolvable:$true] %s47_s20  ;;  %s70_s23 = int_to_ptr.hbm [resolvable:$true] %s69_s23 }
   0xd   :  { %50 = dma.hbm_to_vmem [thread:$0]  %s46_s17, 32, %s48_s20, [#allocation5]  }
   0xe   :  { %s79_s25 = sshll.u32 %s1096_s5, 4  ;;  %s1021_s26 = smov [#allocation9]   ;;  %s80_s25 = int_to_ptr.hbm [resolvable:$true] %s79_s25 }
   0xf   :  { %s71_s2 = sshll.u32 %s1021_s26, 4  ;;  %s1022_s27 = smov [#allocation10]   ;;  %s72_s2 = int_to_ptr.vmem [resolvable:$true] %s71_s2 }
  0x10   :  { %74 = dma.hbm_to_vmem [thread:$0]  %s70_s23, 32, %s72_s2, [#allocation8]  }
  0x11   :  { %s81_s28 = sshll.u32 %s1022_s27, 4  ;;  %s1023_s29 = smov 64   ;;  %s82_s28 = int_to_ptr.vmem [resolvable:$true] %s81_s28 }
  0x12   :  { %s1024_s30 = smov 4  }
  0x13   :  { %87 = dma.hbm_to_vmem [thread:$0]  %s80_s25, 2048, %s82_s28, [#allocation11], %s1023_s29, %s1023_s29, %s1024_s30  }
  0x14   :  { %1007 = dma.done.wait [#allocation3], 128  }
  0x15   :  { %1008 = vsyncadd [#allocation3], 4294967168 }
  0x16   :  { %1009 = dma.done.wait [#allocation5], 288  }
  0x17   :  { %1010 = vsyncadd [#allocation5], 4294967008 }
  0x18   :  { %1011 = dma.done.wait [#allocation8], 4128  }
  0x19   :  { %1012 = vsyncadd [#allocation8], 4294963168 }
  0x1a   :  { %1013 = dma.done.wait [#allocation11], 2048  }
  0x1b   :  { %1014 = vsyncadd [#allocation11], 4294965248  ;;  %v600_v0 = vld [vmem:[#allocation4] sm:$0xf]  ;;  %v801_v1 = vld [vmem:[#allocation4 + $0x4] sm:$0xf0] }
  0x1c   :  { %v800_v2 = vld [vmem:[#allocation4 + $0x4] sm:$0xf]  ;;  %v601_v3 = vor.u32 %v801_v1, %v600_v0  ;;  %v602_v4 = vld [vmem:[#allocation4 + $0x8] sm:$0xf0]  ;;  %v115_v5 = vld [vmem:[#allocation2] sm:$0xff]  ;;  %vm135_vm0 = vcmask 130048  }
  0x1d   :  { %v666_v6 = vld [vmem:[#allocation7 + $0x70] sm:$0xf]  ;;  %v605_v7 = vor.u32 %v800_v2, %v602_v4  ;;  %v116_v8 = vpack.c.bf16 %v115_v5, %v115_v5  ;;  %v817_v9 = vld [vmem:[#allocation7 + $0x74] sm:$0xf0]  ;;  %v816_v14 = vld [vmem:[#allocation7 + $0x74] sm:$0xf] }
  0x1e   :  { %v730_v10 = vld [vmem:[#allocation7 + $0xf0] sm:$0xf]  ;;  %v833_v11 = vld [vmem:[#allocation7 + $0xf4] sm:$0xf0]  ;;  %146 = vmatpush.bf16.msra.mxu0 %v601_v3  ;;  %v667_v12 = vor.u32 %v817_v9, %v666_v6  ;;  %v668_v15 = vld [vmem:[#allocation7 + $0x78] sm:$0xf0] }
  0x1f   :  { %v731_v13 = vor.u32 %v833_v11, %v730_v10  ;;  %v832_v16 = vld [vmem:[#allocation7 + $0xf4] sm:$0xf]  ;;  %159 = vmatpush.bf16.msra.mxu1 %v605_v7  ;;  %v671_v17 = vor.u32 %v816_v14, %v668_v15  ;;  %v732_v18 = vld [vmem:[#allocation7 + $0xf8] sm:$0xf0]  ;;  %v658_v19 = vld [vmem:[#allocation7 + $0x60] sm:$0xf] }
  0x20   :  { %v815_v20 = vld [vmem:[#allocation7 + $0x64] sm:$0xf0]  ;;  %367 = vmatpush.bf16.msra.mxu2 %v667_v12  ;;  %v735_v21 = vor.u32 %v832_v16, %v732_v18  ;;  %v722_v23 = vld [vmem:[#allocation7 + $0xe0] sm:$0xf]  ;;  %v814_v25 = vld [vmem:[#allocation7 + $0x64] sm:$0xf] }
  0x21   :  { %380 = vmatpush.bf16.msra.mxu3 %v731_v13  ;;  %v659_v22 = vor.u32 %v815_v20, %v658_v19  ;;  %v831_v24 = vld [vmem:[#allocation7 + $0xe4] sm:$0xf0]  ;;  %606 = vmatmul.msk.bf16.vlgmr.msra.gmra.mxu0 %vm135_vm0, %v116_v8  ;;  %v660_v27 = vld [vmem:[#allocation7 + $0x68] sm:$0xf0]  ;;  %v830_v28 = vld [vmem:[#allocation7 + $0xe4] sm:$0xf] }
  0x22   :  { %v723_v26 = vor.u32 %v831_v24, %v722_v23  ;;  %v724_v29 = vld [vmem:[#allocation7 + $0xe8] sm:$0xf0]  ;;  %607 = vmatmul.msk.bf16.vlgmr.msra.gmra.mxu1 %vm135_vm0, %v116_v8  ;;  %393 = vmatpush.bf16.msrb.mxu0 %v671_v17  ;;  %v663_v30 = vor.u32 %v814_v25, %v660_v27  ;;  %v650_v31 = vld [vmem:[#allocation7 + $0x50] sm:$0xf]  ;;  %v813_v32 = vld [vmem:[#allocation7 + $0x54] sm:$0xf0] }
  0x23   :  { %v714_v33 = vld [vmem:[#allocation7 + $0xd0] sm:$0xf]  ;;  %406 = vmatpush.bf16.msrb.mxu1 %v735_v21  ;;  %v727_v34 = vor.u32 %v830_v28, %v724_v29  ;;  %v829_v35 = vld [vmem:[#allocation7 + $0xd4] sm:$0xf0]  ;;  %v812_v36 = vld [vmem:[#allocation7 + $0x54] sm:$0xf]  ;;  %v651_v38 = vor.u32 %v813_v32, %v650_v31 }
  0x24   :  { %v652_v37 = vld [vmem:[#allocation7 + $0x58] sm:$0xf0]  ;;  %368 = vmatpush.bf16.msra.mxu2 %v659_v22  ;;  %v715_v39 = vor.u32 %v829_v35, %v714_v33  ;;  %v828_v40 = vld [vmem:[#allocation7 + $0xd4] sm:$0xf]  ;;  %v642_v42 = vld [vmem:[#allocation7 + $0x40] sm:$0xf] }
  0x25   :  { %381 = vmatpush.bf16.msra.mxu3 %v723_v26  ;;  %v716_v41 = vld [vmem:[#allocation7 + $0xd8] sm:$0xf0]  ;;  %v811_v43 = vld [vmem:[#allocation7 + $0x44] sm:$0xf0]  ;;  %v706_v44 = vld [vmem:[#allocation7 + $0xc0] sm:$0xf]  ;;  %v655_v46 = vor.u32 %v812_v36, %v652_v37 }
  0x26   :  { %v827_v45 = vld [vmem:[#allocation7 + $0xc4] sm:$0xf0]  ;;  %394 = vmatpush.bf16.msrb.mxu0 %v663_v30  ;;  %v719_v47 = vor.u32 %v828_v40, %v716_v41  ;;  %v810_v48 = vld [vmem:[#allocation7 + $0x44] sm:$0xf]  ;;  %v644_v49 = vld [vmem:[#allocation7 + $0x48] sm:$0xf0]  ;;  %v643_v50 = vor.u32 %v811_v43, %v642_v42 }
  0x27   :  { %407 = vmatpush.bf16.msrb.mxu1 %v727_v34  ;;  %v707_v51 = vor.u32 %v827_v45, %v706_v44  ;;  %v826_v52 = vld [vmem:[#allocation7 + $0xc4] sm:$0xf]  ;;  %v708_v53 = vld [vmem:[#allocation7 + $0xc8] sm:$0xf0]  ;;  %v634_v54 = vld [vmem:[#allocation7 + $0x30] sm:$0xf]  ;;  %v647_v58 = vor.u32 %v810_v48, %v644_v49 }
  0x28   :  { %369 = vmatpush.bf16.msra.mxu2 %v651_v38  ;;  %v809_v55 = vld [vmem:[#allocation7 + $0x34] sm:$0xf0]  ;;  %v698_v56 = vld [vmem:[#allocation7 + $0xb0] sm:$0xf]  ;;  %v711_v59 = vor.u32 %v826_v52, %v708_v53  ;;  %v808_v60 = vld [vmem:[#allocation7 + $0x34] sm:$0xf] }
  0x29   :  { %382 = vmatpush.bf16.msra.mxu3 %v715_v39  ;;  %v825_v57 = vld [vmem:[#allocation7 + $0xb4] sm:$0xf0]  ;;  %v636_v61 = vld [vmem:[#allocation7 + $0x38] sm:$0xf0]  ;;  %v824_v62 = vld [vmem:[#allocation7 + $0xb4] sm:$0xf]  ;;  %v635_v63 = vor.u32 %v809_v55, %v634_v54 }
  0x2a   :  { %395 = vmatpush.bf16.msrb.mxu0 %v655_v46  ;;  %v699_v0 = vor.u32 %v825_v57, %v698_v56  ;;  %v700_v1 = vld [vmem:[#allocation7 + $0xb8] sm:$0xf0]  ;;  %v626_v2 = vld [vmem:[#allocation7 + $0x20] sm:$0xf]  ;;  %v807_v3 = vld [vmem:[#allocation7 + $0x24] sm:$0xf0]  ;;  %v639_v6 = vor.u32 %v808_v60, %v636_v61 }
  0x2b   :  { %408 = vmatpush.bf16.msrb.mxu1 %v719_v47  ;;  %v690_v4 = vld [vmem:[#allocation7 + $0xa0] sm:$0xf]  ;;  %v823_v5 = vld [vmem:[#allocation7 + $0xa4] sm:$0xf0]  ;;  %v703_v7 = vor.u32 %v824_v62, %v700_v1  ;;  %v806_v8 = vld [vmem:[#allocation7 + $0x24] sm:$0xf]  ;;  %v627_v10 = vor.u32 %v807_v3, %v626_v2 }
  0x2c   :  { %370 = vmatpush.bf16.msra.mxu2 %v643_v50  ;;  %v628_v9 = vld [vmem:[#allocation7 + $0x28] sm:$0xf0]  ;;  %v691_v11 = vor.u32 %v823_v5, %v690_v4  ;;  %v822_v12 = vld [vmem:[#allocation7 + $0xa4] sm:$0xf]  ;;  %v618_v16 = vld [vmem:[#allocation7 + $0x10] sm:$0xf] }
  0x2d   :  { %383 = vmatpush.bf16.msra.mxu3 %v707_v51  ;;  %v692_v13 = vld [vmem:[#allocation7 + $0xa8] sm:$0xf0]  ;;  %v631_v14 = vor.u32 %v806_v8, %v628_v9  ;;  %v805_v17 = vld [vmem:[#allocation7 + $0x14] sm:$0xf0]  ;;  %v682_v18 = vld [vmem:[#allocation7 + $0x90] sm:$0xf] }
  0x2e   :  { %396 = vmatpush.bf16.msrb.mxu0 %v647_v58  ;;  %v695_v15 = vor.u32 %v822_v12, %v692_v13  ;;  %v619_v19 = vor.u32 %v805_v17, %v618_v16  ;;  %v821_v20 = vld [vmem:[#allocation7 + $0x94] sm:$0xf0]  ;;  %v804_v21 = vld [vmem:[#allocation7 + $0x14] sm:$0xf]  ;;  %v620_v22 = vld [vmem:[#allocation7 + $0x18] sm:$0xf0] }
  0x2f   :  { %409 = vmatpush.bf16.msrb.mxu1 %v711_v59  ;;  %v683_v23 = vor.u32 %v821_v20, %v682_v18  ;;  %v623_v24 = vor.u32 %v804_v21, %v620_v22  ;;  %v820_v25 = vld [vmem:[#allocation7 + $0x94] sm:$0xf]  ;;  %v684_v26 = vld [vmem:[#allocation7 + $0x98] sm:$0xf0]  ;;  %v610_v28 = vld [vmem:[#allocation7] sm:$0xf] }
  0x30   :  { %371 = vmatpush.bf16.msra.mxu2 %v635_v63  ;;  %v687_v27 = vor.u32 %v820_v25, %v684_v26  ;;  %v803_v29 = vld [vmem:[#allocation7 + $0x4] sm:$0xf0]  ;;  %v674_v30 = vld [vmem:[#allocation7 + $0x80] sm:$0xf]  ;;  %v802_v33 = vld [vmem:[#allocation7 + $0x4] sm:$0xf] }
  0x31   :  { %384 = vmatpush.bf16.msra.mxu3 %v699_v0  ;;  %v611_v31 = vor.u32 %v803_v29, %v610_v28  ;;  %v819_v32 = vld [vmem:[#allocation7 + $0x84] sm:$0xf0]  ;;  %v612_v34 = vld [vmem:[#allocation7 + $0x8] sm:$0xf0]  ;;  %v818_v37 = vld [vmem:[#allocation7 + $0x84] sm:$0xf] }
  0x32   :  { %397 = vmatpush.bf16.msrb.mxu0 %v639_v6  ;;  %v675_v35 = vor.u32 %v819_v32, %v674_v30  ;;  %v615_v36 = vor.u32 %v802_v33, %v612_v34  ;;  %v676_v38 = vld [vmem:[#allocation7 + $0x88] sm:$0xf0]  ;;  %v849_v40 = vld [vmem:[#allocation10 + $0x78] sm:$0xff]  ;;  %v848_v42 = vld [vmem:[#allocation10 + $0x70] sm:$0xff]  ;;  %v585_v32 = vlaneseq }
  0x33   :  { %410 = vmatpush.bf16.msrb.mxu1 %v703_v7  ;;  %v679_v39 = vor.u32 %v818_v37, %v676_v38  ;;  %v841_v41 = vld [vmem:[#allocation10 + $0x38] sm:$0xff]  ;;  %v840_v43 = vld [vmem:[#allocation10 + $0x30] sm:$0xff]  ;;  %v847_v44 = vld [vmem:[#allocation10 + $0x68] sm:$0xff] }
  0x34   :  { %372 = vmatpush.bf16.msra.mxu2 %v627_v10  ;;  %v839_v45 = vld [vmem:[#allocation10 + $0x28] sm:$0xff]  ;;  %v846_v46 = vld [vmem:[#allocation10 + $0x60] sm:$0xff]  ;;  %v845_v48 = vld [vmem:[#allocation10 + $0x58] sm:$0xff] }
  0x35   :  { %385 = vmatpush.bf16.msra.mxu3 %v691_v11  ;;  %v838_v47 = vld [vmem:[#allocation10 + $0x20] sm:$0xff]  ;;  %v119_v49 = vld [vmem:[#allocation6] sm:$0x3]  ;;  %v844_v50 = vld [vmem:[#allocation10 + $0x50] sm:$0xff] }
  0x36   :  { %398 = vmatpush.bf16.msrb.mxu0 %v631_v14  ;;  %v121_v51 = vperm.slane %v119_v49, 0  ;;  %v122_v52 = vperm.slane %v119_v49, 1  ;;  %v837_v63 = vld [vmem:[#allocation10 + $0x18] sm:$0xff]  ;;  %v843_v0 = vld [vmem:[#allocation10 + $0x48] sm:$0xff]  ;;  %v836_v1 = vld [vmem:[#allocation10 + $0x10] sm:$0xff] }
  0x37   :  { %411 = vmatpush.bf16.msrb.mxu1 %v695_v15  ;;  %v842_v2 = vld [vmem:[#allocation10 + $0x40] sm:$0xff]  ;;  %v835_v3 = vld [vmem:[#allocation10 + $0x8] sm:$0xff]  ;;  %v201_v5 = vld [vmem:[#allocation9] sm:$0x3] }
  0x38   :  { %373 = vmatpush.bf16.msra.mxu2 %v619_v19  ;;  %v834_v4 = vld [vmem:[#allocation10] sm:$0xff]  ;;  %v204_v6 = vperm.slane %v201_v5, 1  ;;  %v203_v11 = vperm.slane %v201_v5, 0 }
  0x39   :  { %386 = vmatpush.bf16.msra.mxu3 %v683_v23  ;;  %v860_v25 = vld [vmem:[%s1097_s6] ss:$0 sm:$0xff] }
  0x3a   :  { %399 = vmatpush.bf16.msrb.mxu0 %v623_v24 }
  0x3b   :  { %412 = vmatpush.bf16.msrb.mxu1 %v687_v27 }
  0x3c   :  { %374 = vmatpush.bf16.msra.mxu2 %v611_v31 }
  0x3d   :  { %387 = vmatpush.bf16.msra.mxu3 %v675_v35  ;;  %v586_v35 = vand.u32 127, %v585_v32 }
  0x3e   :  { %400 = vmatpush.bf16.msrb.mxu0 %v615_v36 }
  0x3f   :  { %413 = vmatpush.bf16.msrb.mxu1 %v679_v39  ;;  %vm587_vm1 = vcmp.lt.s32.totalorder %v586_v35, 8 }
  0x40   :  { %555 = vmatpush.bf16.msrb.mxu2 %v841_v41 }
  0x41   :  { %568 = vmatpush.bf16.msrb.mxu3 %v849_v40 }
  0x44   :  { %556 = vmatpush.bf16.msrb.mxu2 %v840_v43 }
  0x45   :  { %569 = vmatpush.bf16.msrb.mxu3 %v848_v42 }
  0x48   :  { %557 = vmatpush.bf16.msrb.mxu2 %v839_v45 }
  0x49   :  { %570 = vmatpush.bf16.msrb.mxu3 %v847_v44 }
  0x4c   :  { %558 = vmatpush.bf16.msrb.mxu2 %v838_v47 }
  0x4d   :  { %571 = vmatpush.bf16.msrb.mxu3 %v846_v46 }
  0x50   :  { %559 = vmatpush.bf16.msrb.mxu2 %v837_v63 }
  0x51   :  { %572 = vmatpush.bf16.msrb.mxu3 %v845_v48 }
  0x54   :  { %560 = vmatpush.bf16.msrb.mxu2 %v836_v1 }
  0x55   :  { %573 = vmatpush.bf16.msrb.mxu3 %v844_v50 }
  0x58   :  { %561 = vmatpush.bf16.msrb.mxu2 %v835_v3 }
  0x59   :  { %574 = vmatpush.bf16.msrb.mxu3 %v843_v0 }
  0x5c   :  { %562 = vmatpush.bf16.msrb.mxu2 %v834_v4 }
  0x5d   :  { %575 = vmatpush.bf16.msrb.mxu3 %v842_v2 }
  0x9e   :  { %v148_v53 = vpop.f32.mrf.mxu0 }
  0x9f   :  { %v149_v54 = vadd.f32 %v148_v53, %v121_v51  ;;  %v161_v55 = vpop.f32.mrf.mxu1 }
  0xa0   :  { %v162_v56 = vadd.f32 %v161_v55, %v122_v52 }
  0xa1   :  { %v165_v57 = vmax.f32 %v149_v54, 0.0 }
  0xa2   :  { %v166_v58 = vmax.f32 %v162_v56, 0.0 }
  0xa3   :  { %v167_v59 = vpack.c.bf16 %v165_v57, %v165_v57 }
  0xa4   :  { %v168_v60 = vpack.c.bf16 %v166_v58, %v166_v58 }
  0xa5   :  { %375 = vmatmul.bf16.vlgmr.msra.gmra.mxu2 %v167_v59  ;;  %401 = vmatmul.bf16.vlgmr.msrb.gmra.mxu0 %v167_v59 }
  0xa6   :  { %388 = vmatmul.bf16.vlgmr.msra.gmra.mxu3 %v168_v60  ;;  %414 = vmatmul.bf16.vlgmr.msrb.gmra.mxu1 %v168_v60  ;;  %v150_v61 = vpop.f32.mrf.mxu0 }
  0xa7   :  { %v163_v62 = vpop.f32.mrf.mxu1 }
 0x122   :  { %v402_v7 = vpop.f32.mrf.mxu0 }
 0x123   :  { %v403_v8 = vadd.f32 %v402_v7, %v204_v6  ;;  %v415_v9 = vpop.f32.mrf.mxu1 }
 0x125   :  { %v416_v10 = vadd.f32 %v415_v9, %v403_v8 }
 0x127   :  { %v420_v12 = vmax.f32 %v416_v10, 0.0 }
 0x128   :  { %v376_v13 = vpop.f32.mrf.mxu2 }
 0x129   :  { %v422_v14 = vpack.c.bf16 %v420_v12, %v420_v12  ;;  %v377_v15 = vadd.f32 %v376_v13, %v203_v11  ;;  %v389_v16 = vpop.f32.mrf.mxu3 }
 0x12a   :  { %v404_v17 = vpop.f32.mrf.mxu0 }
 0x12b   :  { %v390_v18 = vadd.f32 %v389_v16, %v377_v15  ;;  %v417_v19 = vpop.f32.mrf.mxu1  ;;  %576 = vmatmul.bf16.vlgmr.msrb.gmra.mxu3 %v422_v14 }
 0x12d   :  { %v419_v20 = vmax.f32 %v390_v18, 0.0 }
 0x12f   :  { %v421_v21 = vpack.c.bf16 %v419_v20, %v419_v20 }
 0x130   :  { %v378_v22 = vpop.f32.mrf.mxu2 }
 0x131   :  { %v391_v23 = vpop.f32.mrf.mxu3  ;;  %563 = vmatmul.bf16.vlgmr.msrb.gmra.mxu2 %v421_v21 }
 0x1ae   :  { %v577_v24 = vpop.f32.mrf.mxu3 }
 0x1b4   :  { %v564_v26 = vpop.f32.mrf.mxu2 }
 0x1b5   :  { %v565_v27 = vadd.f32 %v860_v25, %v564_v26 }
 0x1b6   :  { %v579_v28 = vpop.f32.mrf.mxu3 }
 0x1b7   :  { %v578_v29 = vadd.f32 %v577_v24, %v565_v27 }
 0x1b9   :  { %v581_v30 = vmax.f32 %v578_v29, -20.0 }
 0x1bb   :  { %v582_v31 = vmin.f32 %v581_v30, 2.0 }
 0x1bc   :  { %v566_v33 = vpop.f32.mrf.mxu2 }
 0x1bd   :  { %v583_v34 = vmul.f32 1.442695, %v582_v31 }
 0x1bf   :  { %861 = vpow2.f32 %v583_v34 }
 0x1c5   :  { %v862_v36 = vpop.eup %861 }
 0x1c6   :  { %v588_v37 = vsel %vm587_vm1, %v578_v29, %v862_v36 }
 0x1c7   :  { %589 = vst [vmem:[%s1098_s7] sm:$0xff] %v588_v37 }
 0x1c8   :  { %594 = vsyncpa [#allocation3], 1 }
 0x1c9   :  { %595 = vsyncpa [#allocation5], 1 }
 0x1ca   :  { %596 = vsyncpa [#allocation8], 1 }
 0x1cb   :  { %597 = vsyncpa [#allocation11], 1 }

</bundles_post_ra>
